<compile_context>
chip_gen: v7x
topology: tpu7x:2x2x1
jax: 0.10.0
libtpu: 0.0.40
codegen_flags: <defaults>
</compile_context>

<pallas_src>
import numpy as np
import jax
import jax.numpy as jnp
from jax import lax
from jax.experimental import pallas as pl
from jax.experimental.pallas import tpu as pltpu

TEMPERATURE = 12.5  # DeepEMD default temperature for the opencv branch


def _deepemd_kernel(q_ref, p_ref, sim_ref, w1_ref, w2_ref, logits_ref,
                    *, nq, sq, way, sp):
    """q_ref:   (Nq*Sq, C)      f32  channels-last query slab
       p_ref:   (C, WP_pad)     f32  channels-first proto slab (zero-padded cols)
       sim_ref: (Nq*Sq, WP_pad)      cosine similarity slab
       w1_ref:  (Nq*Sq, way)         weight_1 slab
       w2_ref:  (Nq, WP_pad)         weight_2 slab
       logits_ref: (Nq, way)
    """
    q2 = q_ref[...]                                   # (Nq*Sq, C), C on lanes
    p = p_ref[...]                                    # (C, WP_pad)
    wp_pad = p.shape[1]
    nqsq = q2.shape[0]

    # Block-indicator matrices (built on the VPU, consumed by the MXU) replace
    # reshapes / segment reductions:
    #   blk_p (WP_pad, way): column w is 1 on rows [w*Sp, (w+1)*Sp)  (pad rows 0)
    #   blk_q (Nq, Nq*Sq)  : row    i is 1 on cols [i*Sq, (i+1)*Sq)
    r = lax.broadcasted_iota(jnp.int32, (wp_pad, way), 0)
    c = lax.broadcasted_iota(jnp.int32, (wp_pad, way), 1)
    d = r - c * sp
    blk_p = jnp.where((d >= 0) & (d < sp), 1.0, 0.0).astype(jnp.float32)

    rq = lax.broadcasted_iota(jnp.int32, (nq, nqsq), 0)
    cq = lax.broadcasted_iota(jnp.int32, (nq, nqsq), 1)
    dq = cq - rq * sq
    blk_q = jnp.where((dq >= 0) & (dq < sq), 1.0, 0.0).astype(jnp.float32)

    # ---- get_weight_vector: adaptive-avg-pool of the anchor, channel dot ----
    qm = jnp.dot(blk_q, q2, preferred_element_type=jnp.float32) * (1.0 / sq)   # (Nq, C)
    pm = jnp.dot(p, blk_p, preferred_element_type=jnp.float32) * (1.0 / sp)    # (C, way)

    # weight_1[(i,s), j] = relu(sum_c query[i,s,c] * proto_mean[c,j]) + 1e-3
    w1 = jnp.dot(q2, pm, preferred_element_type=jnp.float32)                   # (Nq*Sq, way)
    w1_ref[...] = jnp.maximum(w1, 0.0) + 1e-3
    # weight_2[i, (j,p)] = relu(sum_c query_mean[i,c] * proto[c,(j,p)]) + 1e-3
    w2 = jnp.dot(qm, p, preferred_element_type=jnp.float32)                    # (Nq, WP_pad)
    w2_ref[...] = jnp.maximum(w2, 0.0) + 1e-3

    # ---- normalize_feature: center over the channel axis ----
    qc = q2 - jnp.mean(q2, axis=1, keepdims=True)                              # (Nq*Sq, C)
    pc = p - jnp.mean(p, axis=0, keepdims=True)                                # (C, WP_pad)

    # Per-location inverse L2 norms on the EUP (rsqrt); clamp matches the
    # eps semantics of F.cosine_similarity. Zero-padded proto columns stay
    # exactly zero after centering, so their sim values come out as 0.
    inv_qn = lax.rsqrt(jnp.maximum(jnp.sum(qc * qc, axis=1, keepdims=True), 1e-16))
    inv_pn = lax.rsqrt(jnp.maximum(jnp.sum(pc * pc, axis=0, keepdims=True), 1e-16))

    # ---- get_similarity_map (cosine): single MXU matmul, bf16 in / f32 acc ----
    dots = jnp.dot(qc.astype(jnp.bfloat16), pc.astype(jnp.bfloat16),
                   preferred_element_type=jnp.float32)                         # (Nq*Sq, WP_pad)
    sim = dots * inv_qn * inv_pn
    sim_ref[...] = sim

    # ---- get_emd_distance (reduction part) ----
    # TODO(synk): the cv2.EMD / QPFunction LP solve (optimal-transport flow)
    # has no Pallas equivalent; logits are the similarity sums without the
    # flow re-weighting.
    per_way = jnp.dot(sim, blk_p, preferred_element_type=jnp.float32)          # (Nq*Sq, way)
    logits_ref[...] = jnp.dot(blk_q, per_way,
                              preferred_element_type=jnp.float32) * (TEMPERATURE / sq)


def deepemd_forward(support, query):
    """support: (1, way, C, Hp, Wp), query: (Nq, C, Hq, Wq)  (NCHW-like)."""
    proto = support[0]
    way, C, Hp, Wp = proto.shape
    Nq, _, Hq, Wq = query.shape
    Sp, Sq = Hp * Wp, Hq * Wq
    WP = way * Sp
    WP_pad = int(pl.cdiv(WP, 128)) * 128   # lane-dense sim / weight_2 stores

    # Layout plumbing outside the kernel:
    #   query -> channels-last slab (Nq*Sq, C); proto -> (C, WP_pad) slab.
    q_slab = jnp.transpose(query.reshape(Nq, C, Sq), (0, 2, 1)) \
                .reshape(Nq * Sq, C).astype(jnp.float32)
    p_slab = jnp.transpose(proto.reshape(way, C, Sp), (1, 0, 2)) \
                .reshape(C, WP).astype(jnp.float32)
    if WP_pad != WP:
        p_slab = jnp.pad(p_slab, ((0, 0), (0, WP_pad - WP)))

    vmem = pl.BlockSpec(memory_space=pltpu.MemorySpace.VMEM)
    kernel = lambda *refs: _deepemd_kernel(*refs, nq=Nq, sq=Sq, way=way, sp=Sp)

    sim_slab, w1_slab, w2_slab, logits = pl.pallas_call(
        kernel,
        out_shape=(
            jax.ShapeDtypeStruct((Nq * Sq, WP_pad), jnp.float32),  # similarity slab
            jax.ShapeDtypeStruct((Nq * Sq, way), jnp.float32),     # weight_1 slab
            jax.ShapeDtypeStruct((Nq, WP_pad), jnp.float32),       # weight_2 slab
            jax.ShapeDtypeStruct((Nq, way), jnp.float32),          # logits
        ),
        in_specs=[vmem, vmem],
        out_specs=(vmem, vmem, vmem, vmem),
        compiler_params=pltpu.CompilerParams(
            vmem_limit_bytes=32 * 1024 * 1024),
    )(q_slab, p_slab)

    # Reshape lane-dense slabs back to the PyTorch-convention shapes.
    sim = sim_slab[:, :WP].reshape(Nq, Sq, way, Sp).transpose(0, 2, 1, 3)  # (Nq, way, Sq, Sp)
    w1 = w1_slab.reshape(Nq, Sq, way).transpose(0, 2, 1)                   # (Nq, way, Sq)
    w2 = w2_slab[:, :WP].reshape(Nq, way, Sp).transpose(1, 0, 2)           # (way, Nq, Sp)
    return logits, sim, w1, w2


def deepemd_reference(support, query):
    """Pure-JAX reference of the same semantics (for validation)."""
    proto = support[0]
    way, C, Hp, Wp = proto.shape
    Nq, _, Hq, Wq = query.shape
    Sp, Sq = Hp * Wp, Hq * Wq
    p = proto.reshape(way, C, Sp).astype(jnp.float32)
    q = query.reshape(Nq, C, Sq).astype(jnp.float32)

    pm = p.mean(axis=2)
    qm = q.mean(axis=2)
    w1 = jnp.maximum(jnp.einsum('jc,icq->ijq', pm, q,
                                precision='highest'), 0.0) + 1e-3
    w2 = jnp.maximum(jnp.einsum('ic,jcp->jip', qm, p,
                                precision='highest'), 0.0) + 1e-3

    pc = p - p.mean(axis=1, keepdims=True)
    qc = q - q.mean(axis=1, keepdims=True)
    dots = jnp.einsum('icq,jcp->ijqp', qc, pc, precision='highest')
    qn = jnp.maximum(jnp.sqrt((qc * qc).sum(axis=1)), 1e-8)
    pn = jnp.maximum(jnp.sqrt((pc * pc).sum(axis=1)), 1e-8)
    sim = dots / (qn[:, None, :, None] * pn[None, :, None, :])
    logits = sim.sum(axis=(2, 3)) * (TEMPERATURE / Sq)
    return logits, sim, w1, w2


if __name__ == "__main__":
    # Small shapes consistent with the meta-mode forward:
    #   support (1, way, C, H, W), query (Nq, C, H, W)
    way, Nq, C, H, W = 3, 2, 32, 4, 4
    key = jax.random.PRNGKey(0)
    k1, k2 = jax.random.split(key)
    support = jax.random.normal(k1, (1, way, C, H, W), dtype=jnp.float32)
    query = jax.random.normal(k2, (Nq, C, H, W), dtype=jnp.float32)

    logits, sim, w1, w2 = deepemd_forward(support, query)
    jax.block_until_ready((logits, sim, w1, w2))

    # numerical check against the pure-JAX reference
    logits_r, sim_r, w1_r, w2_r = deepemd_reference(support, query)
    np.testing.assert_allclose(np.asarray(w1), np.asarray(w1_r),
                               rtol=1e-2, atol=1e-2)
    np.testing.assert_allclose(np.asarray(w2), np.asarray(w2_r),
                               rtol=1e-2, atol=1e-2)
    np.testing.assert_allclose(np.asarray(sim), np.asarray(sim_r),
                               rtol=1e-2, atol=1e-2)
    # logits accumulate a bf16-input matmul over Sq*Sp terms -> slightly wider tol
    np.testing.assert_allclose(np.asarray(logits), np.asarray(logits_r),
                               rtol=2e-2, atol=2e-2)

    print("KERNEL_OK")
</pallas_src>

<mosaic_0001>
module attributes {stable_mosaic.version = 11 : i64} {
  func.func @_lambda_(%arg0: memref<32x32xf32, #tpu.memory_space<vmem>>, %arg1: memref<32x128xf32, #tpu.memory_space<vmem>>, %arg2: memref<32x128xf32, #tpu.memory_space<vmem>>, %arg3: memref<32x3xf32, #tpu.memory_space<vmem>>, %arg4: memref<2x128xf32, #tpu.memory_space<vmem>>, %arg5: memref<2x3xf32, #tpu.memory_space<vmem>>) attributes {dimension_semantics = [], scalar_prefetch = 0 : i64, scratch_operands = 0 : i64, tpu.core_type = #tpu.core_type<tc>} {
    %c0 = arith.constant 0 : index
    %c0_0 = arith.constant 0 : index
    %0 = vector.load %arg0[%c0, %c0_0] : memref<32x32xf32, #tpu.memory_space<vmem>>, vector<32x32xf32>
    %c0_1 = arith.constant 0 : index
    %c0_2 = arith.constant 0 : index
    %1 = vector.load %arg1[%c0_1, %c0_2] : memref<32x128xf32, #tpu.memory_space<vmem>>, vector<32x128xf32>
    %2 = tpu.iota {dimensions = array<i32: 0>} : vector<128x3xi32>
    %3 = tpu.iota {dimensions = array<i32: 1>} : vector<128x3xi32>
    %c16_i32 = arith.constant 16 : i32
    %4 = vector.broadcast %c16_i32 : i32 to vector<128x3xi32>
    %5 = arith.muli %3, %4 : vector<128x3xi32>
    %6 = arith.subi %2, %5 : vector<128x3xi32>
    %c0_i32 = arith.constant 0 : i32
    %7 = vector.broadcast %c0_i32 : i32 to vector<128x3xi32>
    %8 = arith.cmpi sge, %6, %7 : vector<128x3xi32>
    %c16_i32_3 = arith.constant 16 : i32
    %9 = vector.broadcast %c16_i32_3 : i32 to vector<128x3xi32>
    %10 = arith.cmpi slt, %6, %9 : vector<128x3xi32>
    %11 = arith.andi %8, %10 : vector<128x3xi1>
    %cst = arith.constant 1.000000e+00 : f32
    %cst_4 = arith.constant 0.000000e+00 : f32
    %12 = vector.broadcast %cst : f32 to vector<128x3xf32>
    %13 = vector.broadcast %cst_4 : f32 to vector<128x3xf32>
    %14 = arith.select %11, %12, %13 : vector<128x3xi1>, vector<128x3xf32>
    %15 = tpu.iota {dimensions = array<i32: 0>} : vector<2x32xi32>
    %16 = tpu.iota {dimensions = array<i32: 1>} : vector<2x32xi32>
    %c16_i32_5 = arith.constant 16 : i32
    %17 = vector.broadcast %c16_i32_5 : i32 to vector<2x32xi32>
    %18 = arith.muli %15, %17 : vector<2x32xi32>
    %19 = arith.subi %16, %18 : vector<2x32xi32>
    %c0_i32_6 = arith.constant 0 : i32
    %20 = vector.broadcast %c0_i32_6 : i32 to vector<2x32xi32>
    %21 = arith.cmpi sge, %19, %20 : vector<2x32xi32>
    %c16_i32_7 = arith.constant 16 : i32
    %22 = vector.broadcast %c16_i32_7 : i32 to vector<2x32xi32>
    %23 = arith.cmpi slt, %19, %22 : vector<2x32xi32>
    %24 = arith.andi %21, %23 : vector<2x32xi1>
    %cst_8 = arith.constant 1.000000e+00 : f32
    %cst_9 = arith.constant 0.000000e+00 : f32
    %25 = vector.broadcast %cst_8 : f32 to vector<2x32xf32>
    %26 = vector.broadcast %cst_9 : f32 to vector<2x32xf32>
    %27 = arith.select %24, %25, %26 : vector<2x32xi1>, vector<2x32xf32>
    %cst_10 = arith.constant dense<0.000000e+00> : vector<2x32xf32>
    %28 = tpu.matmul %27, %0, %cst_10 {dimension_numbers = #tpu.dot_dimension_numbers<[1], [0], [0], [1], [0, 0, 1, 1], [], []>} : vector<2x32xf32>, vector<32x32xf32>, vector<2x32xf32> -> vector<2x32xf32>
    %cst_11 = arith.constant 6.250000e-02 : f32
    %29 = vector.broadcast %cst_11 : f32 to vector<2x32xf32>
    %30 = arith.mulf %28, %29 : vector<2x32xf32>
    %cst_12 = arith.constant dense<0.000000e+00> : vector<32x3xf32>
    %31 = tpu.matmul %1, %14, %cst_12 {dimension_numbers = #tpu.dot_dimension_numbers<[1], [0], [0], [1], [0, 0, 1, 1], [], []>} : vector<32x128xf32>, vector<128x3xf32>, vector<32x3xf32> -> vector<32x3xf32>
    %cst_13 = arith.constant 6.250000e-02 : f32
    %32 = vector.broadcast %cst_13 : f32 to vector<32x3xf32>
    %33 = arith.mulf %31, %32 : vector<32x3xf32>
    %cst_14 = arith.constant dense<0.000000e+00> : vector<32x3xf32>
    %34 = tpu.matmul %0, %33, %cst_14 {dimension_numbers = #tpu.dot_dimension_numbers<[1], [0], [0], [1], [0, 0, 1, 1], [], []>} : vector<32x32xf32>, vector<32x3xf32>, vector<32x3xf32> -> vector<32x3xf32>
    %cst_15 = arith.constant 0.000000e+00 : f32
    %35 = vector.broadcast %cst_15 : f32 to vector<32x3xf32>
    %36 = arith.maximumf %34, %35 : vector<32x3xf32>
    %cst_16 = arith.constant 1.000000e-03 : f32
    %37 = vector.broadcast %cst_16 : f32 to vector<32x3xf32>
    %38 = arith.addf %36, %37 : vector<32x3xf32>
    %c0_17 = arith.constant 0 : index
    %c0_18 = arith.constant 0 : index
    %39 = vector.load %arg3[%c0_17, %c0_18] : memref<32x3xf32, #tpu.memory_space<vmem>>, vector<32x3xf32>
    tpu.vector_store %arg3[%c0_17, %c0_18], %38 {strides = array<i32>} : memref<32x3xf32, #tpu.memory_space<vmem>>, vector<32x3xf32>,
    %cst_19 = arith.constant dense<0.000000e+00> : vector<2x128xf32>
    %40 = tpu.matmul %30, %1, %cst_19 {dimension_numbers = #tpu.dot_dimension_numbers<[1], [0], [0], [1], [0, 0, 1, 1], [], []>} : vector<2x32xf32>, vector<32x128xf32>, vector<2x128xf32> -> vector<2x128xf32>
    %cst_20 = arith.constant 0.000000e+00 : f32
    %41 = vector.broadcast %cst_20 : f32 to vector<2x128xf32>
    %42 = arith.maximumf %40, %41 : vector<2x128xf32>
    %cst_21 = arith.constant 1.000000e-03 : f32
    %43 = vector.broadcast %cst_21 : f32 to vector<2x128xf32>
    %44 = arith.addf %42, %43 : vector<2x128xf32>
    %c0_22 = arith.constant 0 : index
    %c0_23 = arith.constant 0 : index
    %45 = vector.load %arg4[%c0_22, %c0_23] : memref<2x128xf32, #tpu.memory_space<vmem>>, vector<2x128xf32>
    tpu.vector_store %arg4[%c0_22, %c0_23], %44 {strides = array<i32>} : memref<2x128xf32, #tpu.memory_space<vmem>>, vector<2x128xf32>,
    %cst_24 = arith.constant dense<0.000000e+00> : vector<32xf32>
    %46 = vector.multi_reduction <add>, %0, %cst_24 [1] : vector<32x32xf32> to vector<32xf32>
    %47 = vector.shape_cast %46 : vector<32xf32> to vector<32x1xf32>
    %cst_25 = arith.constant 3.200000e+01 : f32
    %48 = vector.broadcast %cst_25 : f32 to vector<32x1xf32>
    %49 = arith.divf %47, %48 : vector<32x1xf32>
    %50 = vector.broadcast %49 : vector<32x1xf32> to vector<32x32xf32>
    %51 = arith.subf %0, %50 : vector<32x32xf32>
    %cst_26 = arith.constant dense<0.000000e+00> : vector<128xf32>
    %52 = vector.multi_reduction <add>, %1, %cst_26 [0] : vector<32x128xf32> to vector<128xf32>
    %53 = vector.shape_cast %52 : vector<128xf32> to vector<1x128xf32>
    %cst_27 = arith.constant 3.200000e+01 : f32
    %54 = vector.broadcast %cst_27 : f32 to vector<1x128xf32>
    %55 = arith.divf %53, %54 : vector<1x128xf32>
    %56 = vector.broadcast %55 : vector<1x128xf32> to vector<32x128xf32>
    %57 = arith.subf %1, %56 : vector<32x128xf32>
    %58 = arith.mulf %51, %51 : vector<32x32xf32>
    %cst_28 = arith.constant dense<0.000000e+00> : vector<32xf32>
    %59 = vector.multi_reduction <add>, %58, %cst_28 [1] : vector<32x32xf32> to vector<32xf32>
    %60 = vector.shape_cast %59 : vector<32xf32> to vector<32x1xf32>
    %cst_29 = arith.constant 1.000000e-16 : f32
    %61 = vector.broadcast %cst_29 : f32 to vector<32x1xf32>
    %62 = arith.maximumf %60, %61 : vector<32x1xf32>
    %63 = math.rsqrt %62 : vector<32x1xf32>
    %64 = arith.mulf %57, %57 : vector<32x128xf32>
    %cst_30 = arith.constant dense<0.000000e+00> : vector<128xf32>
    %65 = vector.multi_reduction <add>, %64, %cst_30 [0] : vector<32x128xf32> to vector<128xf32>
    %66 = vector.shape_cast %65 : vector<128xf32> to vector<1x128xf32>
    %cst_31 = arith.constant 1.000000e-16 : f32
    %67 = vector.broadcast %cst_31 : f32 to vector<1x128xf32>
    %68 = arith.maximumf %66, %67 : vector<1x128xf32>
    %69 = math.rsqrt %68 : vector<1x128xf32>
    %70 = arith.truncf %51 : vector<32x32xf32> to vector<32x32xbf16>
    %71 = arith.truncf %57 : vector<32x128xf32> to vector<32x128xbf16>
    %cst_32 = arith.constant dense<0.000000e+00> : vector<32x128xf32>
    %72 = tpu.matmul %70, %71, %cst_32 {dimension_numbers = #tpu.dot_dimension_numbers<[1], [0], [0], [1], [0, 0, 1, 1], [], []>} : vector<32x32xbf16>, vector<32x128xbf16>, vector<32x128xf32> -> vector<32x128xf32>
    %73 = vector.broadcast %63 : vector<32x1xf32> to vector<32x128xf32>
    %74 = arith.mulf %72, %73 : vector<32x128xf32>
    %75 = vector.broadcast %69 : vector<1x128xf32> to vector<32x128xf32>
    %76 = arith.mulf %74, %75 : vector<32x128xf32>
    %c0_33 = arith.constant 0 : index
    %c0_34 = arith.constant 0 : index
    %77 = vector.load %arg2[%c0_33, %c0_34] : memref<32x128xf32, #tpu.memory_space<vmem>>, vector<32x128xf32>
    tpu.vector_store %arg2[%c0_33, %c0_34], %76 {strides = array<i32>} : memref<32x128xf32, #tpu.memory_space<vmem>>, vector<32x128xf32>,
    %cst_35 = arith.constant dense<0.000000e+00> : vector<32x3xf32>
    %78 = tpu.matmul %76, %14, %cst_35 {dimension_numbers = #tpu.dot_dimension_numbers<[1], [0], [0], [1], [0, 0, 1, 1], [], []>} : vector<32x128xf32>, vector<128x3xf32>, vector<32x3xf32> -> vector<32x3xf32>
    %cst_36 = arith.constant dense<0.000000e+00> : vector<2x3xf32>
    %79 = tpu.matmul %27, %78, %cst_36 {dimension_numbers = #tpu.dot_dimension_numbers<[1], [0], [0], [1], [0, 0, 1, 1], [], []>} : vector<2x32xf32>, vector<32x3xf32>, vector<2x3xf32> -> vector<2x3xf32>
    %cst_37 = arith.constant 7.812500e-01 : f32
    %80 = vector.broadcast %cst_37 : f32 to vector<2x3xf32>
    %81 = arith.mulf %79, %80 : vector<2x3xf32>
    %c0_38 = arith.constant 0 : index
    %c0_39 = arith.constant 0 : index
    %82 = vector.load %arg5[%c0_38, %c0_39] : memref<2x3xf32, #tpu.memory_space<vmem>>, vector<2x3xf32>
    tpu.vector_store %arg5[%c0_38, %c0_39], %81 {strides = array<i32>} : memref<2x3xf32, #tpu.memory_space<vmem>>, vector<2x3xf32>,
    return
  }
}

</mosaic_0001>

<bundles_post_ra>
// kernel: tpu_custom_call.1
= control target key start
LH: loop header
LB: loop body
LE: loop exit
PB: predicated region body
PF: predicated region fallthrough
CT: control target
= control target key end

     0   :  { %11 = vsyncpa [#allocation3], 0  ;;  %s1742_s0 = inlined_call_operand.hbm [shape: f32[32,32], index: 0, kind: input, shape index: {}]   ;;  %s1743_s1 = inlined_call_operand.hbm [shape: f32[32,128], index: 1, kind: input, shape index: {}]   ;;  %s1744_s2 = inlined_call_operand.hbm [shape: f32[32,128], index: 2, kind: output, shape index: {0}]   ;;  %s1745_s3 = inlined_call_operand.vmem [shape: f32[32,3], index: 3, kind: output, shape index: {1}]   ;;  %s1746_s4 = inlined_call_operand.hbm [shape: f32[2,128], index: 4, kind: output, shape index: {2}]   ;;  %s1747_s5 = inlined_call_operand.hbm [shape: f32[2,3], index: 5, kind: output, shape index: {3}]  }
   0x1   :  { %12 = vsyncpa [#allocation6], 0 }
   0x2   :  { %13 = vsyncpa [#allocation4], 0 }
   0x3   :  { %14 = vsyncpa [#allocation9], 0  ;;  %s1330_s18 = smov [#allocation2]   ;;  %s1212_s22 = scalar_lea.hbm %s1742_s0, 512 }
   0x4   :  { %s20_s19 = sshll.u32 %s1330_s18, 4  ;;  %p1213_p0 = scmp.ne.s32.totalorder %s1742_s0, %s1212_s22  ;;  %s21_s19 = int_to_ptr.vmem [resolvable:$true] %s20_s19 }
   0x5   :  { %p1216_p1 = scmp.lt.u32.totalorder %s1212_s22, %s1742_s0 }
   0x7   :  { %p1218_p2 = pnand %p1216_p1, %p1213_p0 }
   0x9   :  { %1221 = shalt.err (!%p1218_p2)
}
   0xa   :  { %s1222_s27 = scalar_lea.vmem %s21_s19, 512  ;;  %p1227_p4 = scmp.lt.s32.totalorder %s21_s19, %s21_s19 }
   0xb   :  { %p1223_p3 = scmp.ne.s32.totalorder %s21_s19, %s1222_s27  ;;  %p1228_p5 = scmp.lt.s32.totalorder %s1222_s27, %s1222_s27 }
   0xd   :  { %p1229_p6 = por %p1228_p5, %p1227_p4 }
   0xf   :  { %p1230_p7 = pnand %p1229_p6, %p1223_p3 }
  0x11   :  { %1233 = shalt.err (!%p1230_p7)
}
  0x12   :  { %s1331_s28 = smov 128   ;;  %s1332_s29 = smov 8  }
  0x13   :  { %26 = dma.hbm_to_vmem [thread:$0]  %s1742_s0, 512, %s21_s19, [#allocation3], %s1331_s28, %s1331_s28, %s1332_s29  }
  0x14   :  { %s1333_s7 = smov [#allocation5]   ;;  %s1234_s11 = scalar_lea.hbm %s1743_s1, 512 }
  0x15   :  { %s32_s8 = sshll.u32 %s1333_s7, 4  ;;  %p1235_p8 = scmp.ne.s32.totalorder %s1743_s1, %s1234_s11  ;;  %s33_s8 = int_to_ptr.vmem [resolvable:$true] %s32_s8 }
  0x16   :  { %p1238_p9 = scmp.lt.u32.totalorder %s1234_s11, %s1743_s1 }
  0x18   :  { %p1240_p10 = pnand %p1238_p9, %p1235_p8 }
  0x1a   :  { %1243 = shalt.err (!%p1240_p10)
}
  0x1b   :  { %s1244_s16 = scalar_lea.vmem %s33_s8, 512  ;;  %p1249_p12 = scmp.lt.s32.totalorder %s33_s8, %s33_s8 }
  0x1c   :  { %p1245_p11 = scmp.ne.s32.totalorder %s33_s8, %s1244_s16  ;;  %p1250_p13 = scmp.lt.s32.totalorder %s1244_s16, %s1244_s16 }
  0x1e   :  { %p1251_p0 = por %p1250_p13, %p1249_p12 }
  0x20   :  { %p1252_p1 = pnand %p1251_p0, %p1245_p11 }
  0x22   :  { %1255 = shalt.err (!%p1252_p1)
}
  0x23   :  { %38 = dma.hbm_to_vmem [thread:$0]  %s1743_s1, 512, %s33_s8, [#allocation6], %s1331_s28, %s1331_s28, %s1332_s29  }
  0x24   :  { %1322 = dma.done.wait [#allocation3], 512  }
  0x25   :  { %1323 = vsyncadd [#allocation3], 4294966784 }
  0x26   :  { %1324 = dma.done.wait [#allocation6], 512  }
  0x27   :  { %1325 = vsyncadd [#allocation6], 4294966784  ;;  %v54_v0 = vlaneseq  ;;  %v1334_v1 = vmov 0.0|0.0   ;;  %vm1748_vm0 = vmmov 0   ;;  %v1336_v2 = vmov 0.0   ;;  %v1413_v7 = vld [vmem:[#allocation2] sm:$0xff] }
  0x28   :  { %1101 = vmatprep.subr.bf16.mxu1 %v1334_v1  ;;  %978 = vmatprep.mubr.msk.f32.mxu1 %vm1748_vm0, %v1336_v2  ;;  %v1415_v8 = vld [vmem:[#allocation2 + $0x8] sm:$0xff]  ;;  %v1417_v9 = vld [vmem:[#allocation2 + $0x10] sm:$0xff]  ;;  %vm1749_vm1 = vcmask 261120   ;;  %v1421_v11 = vld [vmem:[#allocation2 + $0x18] sm:$0xff]  ;;  %s1338_s25 = smov [#allocation8]   ;;  %s1339_s27 = smov [#allocation7]  }
  0x29   :  { %v1404_v3 = vshrl.u32 %v54_v0, 7  ;;  %v1406_v4 = vand.u32 127, %v54_v0  ;;  %1147 = vmatprep.subr.bf16.mxu0 %v1334_v1  ;;  %1041 = vmatprep.mubr.msk.f32.mxu0 %vm1748_vm0, %v1336_v2  ;;  %v1102_v10 = vpack.c.bf16 %v1415_v8, %v1413_v7  ;;  %v510_v12 = vsel %vm1749_vm1, %v1413_v7, 0.0  ;;  %v50_v18 = vld [vmem:[#allocation5] sm:$0xff]  ;;  %v1439_v19 = vld [vmem:[#allocation5 + $0x8] sm:$0xff]  ;;  %v1443_v21 = vld [vmem:[#allocation5 + $0x10] sm:$0xff] }
  0x2a   :  { %511 = vadd.xlane.f32.xlu0 %v510_v12  ;;  %v516_v13 = vsel %vm1749_vm1, %v1417_v9, 0.0  ;;  %v1105_v14 = vpack.c.bf16 %v1421_v11, %v1417_v9  ;;  %v513_v15 = vsel %vm1749_vm1, %v1415_v8, 0.0  ;;  %v519_v16 = vsel %vm1749_vm1, %v1421_v11, 0.0  ;;  %v1445_v22 = vld [vmem:[#allocation5 + $0x18] sm:$0xff]  ;;  %s833_s26 = sshll.u32 %s1338_s25, 4  ;;  %s818_s30 = sshll.u32 %s1339_s27, 4  ;;  %s834_s26 = int_to_ptr.vmem [resolvable:$true] %s833_s26  ;;  %s819_s30 = int_to_ptr.vmem [resolvable:$true] %s818_s30 }
  0x2b   :  { %v154_v5 = vmul.u32 16, %v1404_v3  ;;  %1103 = vmatpush3.bf16.msra.mxu1 %v1102_v10  ;;  %517 = vadd.xlane.f32.xlu1 %v516_v13  ;;  %v1148_v20 = vpack.c.bf16 %v1439_v19, %v50_v18  ;;  %v1151_v23 = vpack.c.bf16 %v1445_v22, %v1443_v21  ;;  %v531_v24 = vadd.f32 %v1439_v19, %v50_v18  ;;  %s1256_s6 = scalar_lea.vmem %s834_s26, 32  ;;  %p1261_p3 = scmp.lt.s32.totalorder %s834_s26, %s834_s26 }
  0x2c   :  { %1104 = vmatprep.subr.bf16.mxu1 %v1334_v1  ;;  %v1497_v12 = vmul.u32 16, %v1406_v4  ;;  %v56_v13 = vadd.s32 8, %v1404_v3  ;;  %p1257_p2 = scmp.ne.s32.totalorder %s834_s26, %s1256_s6  ;;  %p1262_p4 = scmp.lt.s32.totalorder %s1256_s6, %s1256_s6 }
  0x2d   :  { %v155_v6 = vsub.s32 %v1406_v4, %v154_v5  ;;  %1149 = vmatpush3.bf16.msra.mxu0 %v1148_v20  ;;  %v532_v25 = vadd.f32 %v531_v24, %v1443_v21  ;;  %v60_v20 = vadd.s32 40, %v1404_v3 }
  0x2e   :  { %514 = vadd.xlane.f32.xlu0 %v513_v15  ;;  %1150 = vmatprep.subr.bf16.mxu0 %v1334_v1  ;;  %v57_v15 = vadd.s32 16, %v1404_v3  ;;  %v75_v24 = vsub.s32 %v56_v13, %v1497_v12  ;;  %p1263_p5 = por %p1262_p4, %p1261_p3 }
  0x2f   :  { %vm156_vm2 = vcmp.ge.s32.totalorder %v155_v6, 0  ;;  %vm157_vm3 = vcmp.lt.s32.totalorder %v155_v6, 16  ;;  %1106 = vmatpush3.bf16.msra.mxu1 %v1105_v14  ;;  %520 = vadd.xlane.f32.xlu1 %v519_v16  ;;  %v533_v26 = vadd.f32 %v532_v25, %v1445_v22  ;;  %v74_v14 = vsub.s32 %v1404_v3, %v1497_v12 }
  0x30   :  { %vm158_vm4 = vmand %vm156_vm2, %vm157_vm3  ;;  %v58_v16 = vadd.s32 24, %v1404_v3  ;;  %v76_v4 = vsub.s32 %v57_v15, %v1497_v12  ;;  %vm91_vm8 = vcmp.ge.s32.totalorder %v75_v24, 0  ;;  %vm107_vm9 = vcmp.lt.s32.totalorder %v75_v24, 16  ;;  %p1264_p6 = pnand %p1263_p5, %p1257_p2 }
  0x31   :  { %v1435_v17 = vsel %vm158_vm4, 1.0, %v1336_v2  ;;  %1152 = vmatpush3.bf16.msra.mxu0 %v1151_v23  ;;  %v534_v27 = vrot.slane %v533_v26, 4  ;;  %v61_v23 = vadd.s32 48, %v1404_v3  ;;  %vm90_vm5 = vcmp.ge.s32.totalorder %v74_v14, 0  ;;  %vm123_vm12 = vmand %vm91_vm8, %vm107_vm9 }
  0x32   :  { %979 = vmatmul.mubr.msk.f32.vlgmr.msra.gmra.mrb[0].mxu1 %vm1749_vm1, %v1435_v17  ;;  %vm106_vm6 = vcmp.lt.s32.totalorder %v74_v14, 16  ;;  %v77_v25 = vsub.s32 %v58_v16, %v1497_v12  ;;  %vm92_vm10 = vcmp.ge.s32.totalorder %v76_v4, 0  ;;  %vm108_vm11 = vcmp.lt.s32.totalorder %v76_v4, 16 }
  0x33   :  { %1013 = vmatprep.mubr.f32.mxu1 %v50_v18  ;;  %v535_v28 = vadd.f32 %v534_v27, %v533_v26  ;;  %vm122_vm7 = vmand %vm90_vm5, %vm106_vm6  ;;  %v79_v27 = vsub.s32 %v60_v20, %v1497_v12 }
  0x34   :  { %vm93_vm13 = vcmp.ge.s32.totalorder %v77_v25, 0  ;;  %vm109_vm14 = vcmp.lt.s32.totalorder %v77_v25, 16  ;;  %vm1513_vm15 = vmpackc.low %vm123_vm12, %vm122_vm7 }
  0x35   :  { %v536_v29 = vrot.slane %v535_v28, 2  ;;  %vm124_vm3 = vmand %vm92_vm10, %vm108_vm11  ;;  %vm95_vm6 = vcmp.ge.s32.totalorder %v79_v27, 0  ;;  %vm111_vm7 = vcmp.lt.s32.totalorder %v79_v27, 16 }
  0x36   :  { %vm125_vm5 = vmand %vm93_vm13, %vm109_vm14 }
  0x37   :  { %v537_v30 = vadd.f32 %v536_v29, %v535_v28  ;;  %v62_v28 = vadd.s32 56, %v1404_v3  ;;  %v1756_v29 = vmov 0  ;;  %vm1528_vm8 = vmpackc.low %vm125_vm5, %vm124_vm3 }
  0x38   :  { %v1757_v29 = vsel %vm1513_vm15, 4294967295, %v1756_v29  ;;  %vm127_vm12 = vmand %vm95_vm6, %vm111_vm7 }
  0x39   :  { %v538_v31 = vrot.slane %v537_v30, 1 }
  0x3b   :  { %v539_v32 = vadd.f32 %v538_v31, %v537_v30  ;;  %v80_v30 = vsub.s32 %v61_v23, %v1497_v12  ;;  %v1337_v31 = vmov 1.0|1.0  }
  0x3c   :  { %1108 = vmatprep.subr.msk.bf16.mxu1 %vm1513_vm15, %v1337_v31 }
  0x3d   :  { %v540_v33 = vmul.f32 0.03125, %v539_v32  ;;  %v81_v32 = vsub.s32 %v62_v28, %v1497_v12  ;;  %1110 = vmatpush3.bf16.msk.msra.mxu1 %vm1513_vm15, %v1337_v31  ;;  %vm96_vm10 = vcmp.ge.s32.totalorder %v80_v30, 0  ;;  %vm112_vm11 = vcmp.lt.s32.totalorder %v80_v30, 16 }
  0x3e   :  { %1112 = vmatprep.subr.msk.bf16.mxu1 %vm1528_vm8, %v1337_v31 }
  0x3f   :  { %v541_v34 = vsub.f32 %v50_v18, %v540_v33  ;;  %v542_v35 = vsub.f32 %v1439_v19, %v540_v33  ;;  %v1457_v40 = vsub.f32 %v1443_v21, %v540_v33  ;;  %v1460_v41 = vsub.f32 %v1445_v22, %v540_v33 }
  0x40   :  { %v59_v18 = vadd.s32 32, %v1404_v3  ;;  %v63_v33 = vadd.s32 64, %v1404_v3  ;;  %vm97_vm13 = vcmp.ge.s32.totalorder %v81_v32, 0  ;;  %vm113_vm14 = vcmp.lt.s32.totalorder %v81_v32, 16 }
  0x41   :  { %v1453_v36 = vpack.c.bf16 %v542_v35, %v541_v34  ;;  %v569_v37 = vmul.f32 %v541_v34, %v541_v34  ;;  %v570_v38 = vmul.f32 %v542_v35, %v542_v35  ;;  %v571_v42 = vmul.f32 %v1457_v40, %v1457_v40  ;;  %1114 = vmatpush3.bf16.msk.msra.mxu1 %vm1528_vm8, %v1337_v31  ;;  %vm129_vm6 = vmand %vm97_vm13, %vm113_vm14 }
  0x42   :  { %v572_v43 = vmul.f32 %v1460_v41, %v1460_v41  ;;  %v78_v26 = vsub.s32 %v59_v18, %v1497_v12  ;;  %v64_v34 = vadd.s32 72, %v1404_v3  ;;  %v65_v35 = vadd.s32 80, %v1404_v3 }
  0x43   :  { %1044 = vmatprep.subr.bf16.mxu0 %v1453_v36  ;;  %v573_v39 = vadd.f32 %v570_v38, %v569_v37  ;;  %v1758_v37 = vmov 0  ;;  %v82_v38 = vsub.s32 %v63_v33, %v1497_v12 }
  0x44   :  { %vm94_vm2 = vcmp.ge.s32.totalorder %v78_v26, 0  ;;  %vm110_vm4 = vcmp.lt.s32.totalorder %v78_v26, 16  ;;  %v1759_v37 = vsel %vm1528_vm8, 4294967295, %v1758_v37 }
  0x45   :  { %v574_v44 = vadd.f32 %v573_v39, %v571_v42  ;;  %v66_v39 = vadd.s32 88, %v1404_v3  ;;  %vm126_vm9 = vmand %vm94_vm2, %vm110_vm4  ;;  %v83_v42 = vsub.s32 %v64_v34, %v1497_v12  ;;  %vm98_vm4 = vcmp.ge.s32.totalorder %v82_v38, 0 }
  0x46   :  { %vm1543_vm3 = vmpackc.low %vm127_vm12, %vm126_vm9  ;;  %vm114_vm5 = vcmp.lt.s32.totalorder %v82_v38, 16 }
  0x47   :  { %v1466_v45 = vadd.f32 %v574_v44, %v572_v43  ;;  %v67_v43 = vadd.s32 96, %v1404_v3  ;;  %v1760_v44 = vmov 0  ;;  %1116 = vmatprep.subr.msk.bf16.mxu1 %vm1543_vm3, %v1337_v31  ;;  %vm128_vm2 = vmand %vm96_vm10, %vm112_vm11  ;;  %vm99_vm7 = vcmp.ge.s32.totalorder %v83_v42, 0 }
  0x48   :  { %v1761_v44 = vsel %vm1543_vm3, 4294967295, %v1760_v44  ;;  %vm115_vm0 = vcmp.lt.s32.totalorder %v83_v42, 16  ;;  %vm1553_vm9 = vmpackc.low %vm129_vm6, %vm128_vm2  ;;  %1118 = vmatpush3.bf16.msk.msra.mxu1 %vm1543_vm3, %v1337_v31 }
  0x49   :  { %vm130_vm10 = vmand %vm98_vm4, %vm114_vm5  ;;  %1120 = vmatprep.subr.msk.bf16.mxu1 %vm1553_vm9, %v1337_v31 }
  0x4a   :  { %vm131_vm13 = vmand %vm99_vm7, %vm115_vm0 }
  0x4b   :  { %vm1567_vm6 = vmpackc.low %vm131_vm13, %vm130_vm10 }
  0x4c   :  { %1122 = vmatpush3.bf16.msk.msra.mxu1 %vm1553_vm9, %v1337_v31 }
  0x4d   :  { %1124 = vmatprep.subr.msk.bf16.mxu1 %vm1567_vm6, %v1337_v31 }
  0x50   :  { %1126 = vmatpush3.bf16.msk.msra.mxu1 %vm1567_vm6, %v1337_v31 }
  0xb7   :  { %v512_v46 = vpop.xlane.xlu0 %511 }
  0xb8   :  { %v523_v47 = vmul.f32 0.03125, %v512_v46  ;;  %v518_v48 = vpop.xlane.xlu1 %517  ;;  %v84_v46 = vsub.s32 %v65_v35, %v1497_v12 }
  0xb9   :  { %v525_v49 = vmul.f32 0.03125, %v518_v48  ;;  %v85_v48 = vsub.s32 %v66_v39, %v1497_v12 }
  0xba   :  { %v1469_v50 = vsub.f32 %v1413_v7, %v523_v47  ;;  %v68_v47 = vadd.s32 104, %v1404_v3  ;;  %vm100_vm11 = vcmp.ge.s32.totalorder %v84_v46, 0  ;;  %vm116_vm12 = vcmp.lt.s32.totalorder %v84_v46, 16 }
  0xbb   :  { %v1472_v51 = vsub.f32 %v1417_v9, %v525_v49  ;;  %v515_v52 = vpop.xlane.xlu0 %514  ;;  %vm101_vm14 = vcmp.ge.s32.totalorder %v85_v48, 0  ;;  %vm117_vm2 = vcmp.lt.s32.totalorder %v85_v48, 16 }
  0xbc   :  { %v524_v53 = vmul.f32 0.03125, %v515_v52  ;;  %v521_v54 = vpop.xlane.xlu1 %520  ;;  %v545_v55 = vmul.f32 %v1469_v50, %v1469_v50  ;;  %v86_v52 = vsub.s32 %v67_v43, %v1497_v12  ;;  %vm133_vm5 = vmand %vm101_vm14, %vm117_vm2 }
  0xbd   :  { %v526_v56 = vmul.f32 0.03125, %v521_v54  ;;  %v547_v57 = vmul.f32 %v1472_v51, %v1472_v51  ;;  %v87_v54 = vsub.s32 %v68_v47, %v1497_v12 }
  0xbe   :  { %v1479_v58 = vsub.f32 %v1415_v8, %v524_v53  ;;  %v549_v59 = vsel %vm1749_vm1, %v545_v55, 0.0  ;;  %v69_v53 = vadd.s32 112, %v1404_v3  ;;  %v70_v55 = vadd.s32 120, %v1404_v3 }
  0xbf   :  { %v1483_v60 = vsub.f32 %v1421_v11, %v526_v56  ;;  %550 = vadd.xlane.f32.xlu0 %v549_v59  ;;  %v555_v62 = vsel %vm1749_vm1, %v547_v57, 0.0  ;;  %vm102_vm3 = vcmp.ge.s32.totalorder %v86_v52, 0  ;;  %vm118_vm4 = vcmp.lt.s32.totalorder %v86_v52, 16 }
  0xc0   :  { %v584_v61 = vpack.c.bf16 %v1479_v58, %v1469_v50  ;;  %v546_v63 = vmul.f32 %v1479_v58, %v1479_v58  ;;  %v88_v57 = vsub.s32 %v69_v53, %v1497_v12  ;;  %vm103_vm8 = vcmp.ge.s32.totalorder %v87_v54, 0  ;;  %vm134_vm7 = vmand %vm102_vm3, %vm118_vm4 }
  0xc1   :  { %v585_v0 = vpack.c.bf16 %v1483_v60, %v1472_v51  ;;  %v548_v5 = vmul.f32 %v1483_v60, %v1483_v60  ;;  %vm119_vm15 = vcmp.lt.s32.totalorder %v87_v54, 16  ;;  %v89_v3 = vsub.s32 %v70_v55, %v1497_v12 }
  0xc2   :  { %v552_v6 = vsel %vm1749_vm1, %v546_v63, 0.0  ;;  %vm135_vm10 = vmand %vm103_vm8, %vm119_vm15  ;;  %vm1772_vm8 = vcmask 261120   ;;  %v587_v12 = vpack.c.bf16 %v1460_v41, %v1457_v40 }
  0xc3   :  { %556 = vadd.xlane.f32.xlu0 %v555_v62  ;;  %553 = vadd.xlane.f32.xlu1 %v552_v6  ;;  %v558_v10 = vsel %vm1749_vm1, %v548_v5, 0.0  ;;  %vm132_vm1 = vmand %vm100_vm11, %vm116_vm12  ;;  %vm104_vm11 = vcmp.ge.s32.totalorder %v88_v57, 0  ;;  %vm120_vm12 = vcmp.lt.s32.totalorder %v88_v57, 16  ;;  %vm105_vm13 = vcmp.ge.s32.totalorder %v89_v3, 0 }
  0xc4   :  { %vm1579_vm0 = vmpackc.low %vm133_vm5, %vm132_vm1  ;;  %vm121_vm14 = vcmp.lt.s32.totalorder %v89_v3, 16 }
  0xc5   :  { %1128 = vmatprep.subr.msk.bf16.mxu1 %vm1579_vm0, %v1337_v31  ;;  %vm1589_vm2 = vmpackc.low %vm135_vm10, %vm134_vm7  ;;  %vm1775_vm7 = vnez %v1757_v29 }
  0xc6   :  { %vm136_vm1 = vmand %vm104_vm11, %vm120_vm12  ;;  %1130 = vmatpush3.bf16.msk.msra.mxu1 %vm1579_vm0, %v1337_v31  ;;  %vm1777_vm11 = vnez %v1759_v37  ;;  %vm1778_vm12 = vnez %v1761_v44 }
  0xc7   :  { %559 = vadd.xlane.f32.xlu1 %v558_v10  ;;  %vm137_vm5 = vmand %vm105_vm13, %vm121_vm14  ;;  %1132 = vmatprep.subr.msk.bf16.mxu1 %vm1589_vm2, %v1337_v31  ;;  %vm1782_vm13 = vmmov 0   ;;  %vm429_vm14 = vcmask 23552  }
  0xc8   :  { %vm1599_vm15 = vmpackc.low %vm137_vm5, %vm136_vm1 }
  0xc9   :  { %vm1773_vm3 = vmmov %vm1772_vm8 }
  0xca   :  { %1134 = vmatpush3.bf16.msk.msra.mxu1 %vm1589_vm2, %v1337_v31  ;;  %vm1774_vm4 = vmmov %vm1773_vm3 }
  0xcb   :  { %1136 = vmatprep.subr.msk.bf16.mxu1 %vm1599_vm15, %v1337_v31  ;;  %vm1776_vm10 = vmmov %vm1773_vm3 }
  0xce   :  { %1138 = vmatpush3.bf16.msk.msra.mxu1 %vm1599_vm15, %v1337_v31 }
  0xd1   :  { %1014 = vmatmul.mubr.f32.vlgmr.msra.gmra.mrb[2].mxu1 %v1439_v19 }
  0xd2   :  { %1016 = vmatprep.mubr.f32.mxu1 %v1443_v21 }
  0xd5   :  { %1017 = vmatmul.mubr.f32.gmra.mrb[4].mxu1 %v1445_v22 }
  0xd6   :  { %1027 = vmatprep.mubr.msk.f32.mxu1 %vm1772_vm8, %v1413_v7  ;;  %v576_v7 = vrot.slane %v1466_v45, 4 }
  0xd8   :  { %v577_v19 = vadd.f32 %v576_v7, %v1466_v45 }
  0xda   :  { %v578_v21 = vrot.slane %v577_v19, 2 }
  0xdc   :  { %v579_v22 = vadd.f32 %v578_v21, %v577_v19 }
 0x105   :  { %v230_v5 = vpop.f32.mrb[0].mxu1 }
 0x106   :  { %v234_v6 = vmul.f32 0.0625, %v230_v5  ;;  %v980_v10 = vpop.f32.mrb[1].mxu1 }
 0x108   :  { %1042 = vmatmul.mubr.msk.f32.vlgmr.msra.gmra.mrb[0].mxu0 %vm1773_vm3, %v234_v6 }
 0x109   :  { %1045 = vmatpush3.bf16.msra.mxu0 %v1453_v36  ;;  %1048 = vmatprep.mubr.msk.bf16.mxu0 %vm1774_vm4, %v584_v61  ;;  %v580_v36 = vrot.slane %v579_v22, 1 }
 0x10a   :  { %1046 = vmatprep.subr.bf16.mxu0 %v587_v12 }
 0x10b   :  { %v581_v50 = vadd.f32 %v580_v36, %v579_v22 }
 0x10d   :  { %1047 = vmatpush3.bf16.msra.mxu0 %v587_v12  ;;  %v582_v13 = vmax.f32 %v581_v50, 1e-16 }
 0x10e   :  { %1154 = vmatprep.subr.msk.bf16.mxu0 %vm1775_vm7, %v1337_v31 }
 0x10f   :  { %1202 = vrsqrt.f32 %v582_v13 }
 0x110   :  { %1049 = vmatmul.mubr.msk.bf16.vlgmr.msra.gmra.mrb[4].mxu0 %vm1776_vm10, %v585_v0 }
 0x111   :  { %1156 = vmatpush3.bf16.msk.msra.mxu0 %vm1775_vm7, %v1337_v31 }
 0x112   :  { %1158 = vmatprep.subr.msk.bf16.mxu0 %vm1777_vm11, %v1337_v31 }
 0x115   :  { %1160 = vmatpush3.bf16.msk.msra.mxu0 %vm1777_vm11, %v1337_v31 }
 0x116   :  { %1162 = vmatprep.subr.msk.bf16.mxu0 %vm1778_vm12, %v1337_v31 }
 0x119   :  { %1164 = vmatpush3.bf16.msk.msra.mxu0 %vm1778_vm12, %v1337_v31 }
 0x11a   :  { %1166 = vmatprep.subr.msk.bf16.mxu0 %vm1553_vm9, %v1337_v31 }
 0x11d   :  { %1168 = vmatpush3.bf16.msk.msra.mxu0 %vm1553_vm9, %v1337_v31  ;;  %vm1779_vm9 = vmmov %vm1773_vm3 }
 0x11e   :  { %1170 = vmatprep.subr.msk.bf16.mxu0 %vm1567_vm6, %v1337_v31 }
 0x121   :  { %1172 = vmatpush3.bf16.msk.msra.mxu0 %vm1567_vm6, %v1337_v31  ;;  %vm1780_vm6 = vmmov %vm1773_vm3 }
 0x122   :  { %1174 = vmatprep.subr.msk.bf16.mxu0 %vm1579_vm0, %v1337_v31 }
 0x125   :  { %1176 = vmatpush3.bf16.msk.msra.mxu0 %vm1579_vm0, %v1337_v31  ;;  %vm1781_vm0 = vmmov %vm1773_vm3 }
 0x126   :  { %1178 = vmatprep.subr.msk.bf16.mxu0 %vm1589_vm2, %v1337_v31 }
 0x129   :  { %1180 = vmatpush3.bf16.msk.msra.mxu0 %vm1589_vm2, %v1337_v31  ;;  %vm1783_vm2 = vmmov %vm1781_vm0 }
 0x12a   :  { %1182 = vmatprep.subr.msk.bf16.mxu0 %vm1599_vm15, %v1337_v31 }
 0x12d   :  { %1184 = vmatpush3.bf16.msk.msra.mxu0 %vm1599_vm15, %v1337_v31  ;;  %v1203_v31 = vpop.eup %1202 }
 0x14c   :  { %v551_v40 = vpop.xlane.xlu0 %550 }
 0x14d   :  { %v561_v20 = vmax.f32 %v551_v40, 1e-16 }
 0x150   :  { %v554_v41 = vpop.xlane.xlu1 %553  ;;  %v557_v58 = vpop.xlane.xlu0 %556 }
 0x151   :  { %v563_v15 = vmax.f32 %v557_v58, 1e-16  ;;  %v562_v25 = vmax.f32 %v554_v41, 1e-16 }
 0x153   :  { %1204 = vrsqrt.f32 %v563_v15 }
 0x154   :  { %v560_v14 = vpop.xlane.xlu1 %559  ;;  %1206 = vrsqrt.f32 %v561_v20 }
 0x155   :  { %v564_v45 = vmax.f32 %v560_v14, 1e-16 }
 0x157   :  { %1208 = vrsqrt.f32 %v564_v45 }
 0x158   :  { %1210 = vrsqrt.f32 %v562_v25 }
 0x15d   :  { %v1205_v32 = vpop.eup %1204 }
 0x15e   :  { %v1207_v34 = vpop.eup %1206 }
 0x161   :  { %v1209_v38 = vpop.eup %1208 }
 0x1a4   :  { %v1015_v51 = vpop.f32.mrb[2].mxu1 }
 0x1a5   :  { %v321_v60 = vmul.f32 0.0625, %v1015_v51  ;;  %v301_v61 = vpop.f32.mrb[3].mxu1 }
 0x1a6   :  { %v320_v0 = vmul.f32 0.0625, %v301_v61 }
 0x1a8   :  { %v1139_v16 = vpack.c.bf16 %v321_v60, %v320_v0  ;;  %v1018_v18 = vpop.f32.mrb[4].mxu1 }
 0x1a9   :  { %v323_v23 = vmul.f32 0.0625, %v1018_v18  ;;  %v311_v24 = vpop.f32.mrb[5].mxu1 }
 0x1aa   :  { %v322_v4 = vmul.f32 0.0625, %v311_v24  ;;  %1140 = vmatprep.subr.bf16.mxu1 %v1139_v16 }
 0x1ab   :  { %1142 = vmatpush3.bf16.msra.mxu1 %v1139_v16 }
 0x1ac   :  { %v1143_v26 = vpack.c.bf16 %v323_v23, %v322_v4 }
 0x1ae   :  { %1144 = vmatprep.subr.bf16.mxu1 %v1143_v26 }
 0x1af   :  { %1146 = vmatpush3.bf16.msra.mxu1 %v1143_v26 }
 0x1b0   :  { %1185 = vmatprep.subr.bf16.mxu1 %v1334_v1 }
 0x1b2   :  { %1028 = vmatmul.mubr.msk.f32.vlgmr.msra.gmra.mrb[6].mxu1 %vm1779_vm9, %v1415_v8  ;;  %v1211_v8 = vpop.eup %1210 }
 0x1b3   :  { %1030 = vmatprep.mubr.msk.f32.mxu1 %vm1780_vm6, %v1417_v9 }
 0x1b6   :  { %1031 = vmatmul.mubr.msk.f32.gmra.mrb[8].mxu1 %vm1781_vm0, %v1421_v11 }
 0x1b7   :  { %1098 = vmatprep.mubr.msk.f32.mxu1 %vm1782_vm13, %v1336_v2 }
 0x1db   :  { %v503_v27 = vpop.f32.mrb[0].mxu0 }
 0x1dc   :  { %v507_v28 = vmax.f32 %v503_v27, 0.0  ;;  %v1043_v29 = vpop.f32.mrb[1].mxu0 }
 0x1de   :  { %v508_v30 = vadd.f32 0.001, %v507_v28 }
 0x1e0   :  { %509 = vst [vmem:[#allocation8] sm:$0x3] %v508_v30 }
 0x1e3   :  { %v1050_v33 = vpop.f32.mrb[4].mxu0 }
 0x1e4   :  { %v645_v35 = vmul.f32 %v1205_v32, %v1050_v33  ;;  %v628_v37 = vpop.f32.mrb[5].mxu0 }
 0x1e5   :  { %v643_v39 = vmul.f32 %v1207_v34, %v628_v37  ;;  %v1051_v42 = vpop.f32.mrb[6].mxu0 }
 0x1e6   :  { %v649_v43 = vmul.f32 %v1203_v31, %v645_v35  ;;  %v646_v44 = vmul.f32 %v1209_v38, %v1051_v42  ;;  %v631_v46 = vpop.f32.mrb[7].mxu0 }
 0x1e7   :  { %v647_v9 = vmul.f32 %v1203_v31, %v643_v39  ;;  %v644_v47 = vmul.f32 %v1211_v8, %v631_v46 }
 0x1e8   :  { %653 = vst [vmem:[#allocation7 + $0x10] sm:$0xff] %v649_v43  ;;  %v650_v48 = vmul.f32 %v1203_v31, %v646_v44 }
 0x1e9   :  { %651 = vst [vmem:[#allocation7] sm:$0xff] %v647_v9  ;;  %v648_v49 = vmul.f32 %v1203_v31, %v644_v47  ;;  %1084 = vmatprep.mubr.f32.mxu0 %v647_v9 }
 0x1ea   :  { %654 = vst [vmem:[#allocation7 + $0x18] sm:$0xff] %v650_v48 }
 0x1eb   :  { %652 = vst [vmem:[#allocation7 + $0x8] sm:$0xff] %v648_v49  ;;  %1085 = vmatmul.mubr.f32.vlgmr.msra.gmra.mrb[2].mxu0 %v648_v49 }
 0x1ec   :  { %1087 = vmatprep.mubr.f32.mxu0 %v649_v43 }
 0x1ef   :  { %1088 = vmatmul.mubr.f32.gmra.mrb[8].mxu0 %v650_v48 }
 0x285   :  { %v1029_v2 = vpop.f32.mrb[6].mxu1 }
 0x286   :  { %v422_v11 = vmax.f32 %v1029_v2, 0.0  ;;  %v402_v52 = vpop.f32.mrb[7].mxu1 }
 0x287   :  { %v421_v53 = vmax.f32 %v402_v52, 0.0 }
 0x288   :  { %v426_v54 = vadd.f32 0.001, %v422_v11 }
 0x289   :  { %v425_v55 = vadd.f32 0.001, %v421_v53  ;;  %v1032_v56 = vpop.f32.mrb[8].mxu1 }
 0x28a   :  { %431 = vst.msk [vmem:[%s1745_s3 + $0x8] sm:$0xff] %vm429_vm14, %v426_v54  ;;  %v424_v57 = vmax.f32 %v1032_v56, 0.0  ;;  %v412_v3 = vpop.f32.mrb[9].mxu1 }
 0x28b   :  { %430 = vst.msk [vmem:[%s1745_s3] sm:$0xff] %vm429_vm14, %v425_v55  ;;  %v423_v59 = vmax.f32 %v412_v3, 0.0 }
 0x28c   :  { %v428_v62 = vadd.f32 0.001, %v424_v57 }
 0x28d   :  { %v427_v63 = vadd.f32 0.001, %v423_v59 }
 0x28e   :  { %433 = vst.msk [vmem:[%s1745_s3 + $0x18] sm:$0xff] %vm429_vm14, %v428_v62 }
 0x28f   :  { %432 = vst.msk [vmem:[%s1745_s3 + $0x10] sm:$0xff] %vm429_vm14, %v427_v63 }
 0x2be   :  { %v1086_v5 = vpop.f32.mrb[2].mxu0 }
 0x2bf   :  { %v721_v6 = vpop.f32.mrb[3].mxu0 }
 0x2c0   :  { %v1186_v10 = vpack.c.bf16 %v1086_v5, %v721_v6 }
 0x2c2   :  { %v1089_v12 = vpop.f32.mrb[8].mxu0  ;;  %1187 = vmatpush3.bf16.msra.mxu1 %v1186_v10 }
 0x2c3   :  { %v731_v7 = vpop.f32.mrb[9].mxu0  ;;  %1188 = vmatprep.subr.bf16.mxu1 %v1334_v1 }
 0x2c4   :  { %v1189_v19 = vpack.c.bf16 %v1089_v12, %v731_v7 }
 0x2c6   :  { %1190 = vmatpush3.bf16.msra.mxu1 %v1189_v19 }
 0x2c9   :  { %1099 = vmatmul.mubr.msk.f32.vlgmr.msra.gmra.mrb[10].mxu1 %vm1783_vm2, %v1435_v17 }
 0x2ca   :  { %1267 = shalt.err (!%p1264_p6)
}
 0x2cb   :  { %s1268_s8 = scalar_lea.hbm %s1746_s4, 32 }
 0x2cc   :  { %p1269_p7 = scmp.ne.s32.totalorder %s1746_s4, %s1268_s8  ;;  %p1272_p8 = scmp.lt.u32.totalorder %s1268_s8, %s1746_s4 }
 0x2ce   :  { %p1274_p9 = pnand %p1272_p8, %p1269_p7 }
 0x2d0   :  { %1277 = shalt.err (!%p1274_p9)
}
 0x2d1   :  { %836 = dma.vmem_to_hbm [thread:$0]  %s834_s26, 32, %s1746_s4, [#allocation9]  }
 0x2d2   :  { %s1278_s15 = scalar_lea.vmem %s819_s30, 512  ;;  %p1283_p11 = scmp.lt.s32.totalorder %s819_s30, %s819_s30 }
 0x2d3   :  { %p1279_p10 = scmp.ne.s32.totalorder %s819_s30, %s1278_s15  ;;  %p1284_p12 = scmp.lt.s32.totalorder %s1278_s15, %s1278_s15 }
 0x2d5   :  { %p1285_p13 = por %p1284_p12, %p1283_p11 }
 0x2d7   :  { %p1286_p0 = pnand %p1285_p13, %p1279_p10 }
 0x2d9   :  { %1289 = shalt.err (!%p1286_p0)
}
 0x2da   :  { %s1290_s17 = scalar_lea.hbm %s1744_s2, 512 }
 0x2db   :  { %p1291_p1 = scmp.ne.s32.totalorder %s1744_s2, %s1290_s17  ;;  %p1294_p2 = scmp.lt.u32.totalorder %s1290_s17, %s1744_s2 }
 0x2dd   :  { %p1296_p3 = pnand %p1294_p2, %p1291_p1 }
 0x2df   :  { %1299 = shalt.err (!%p1296_p3)
}
 0x2e0   :  { %824 = dma.vmem_to_hbm [thread:$0]  %s819_s30, 512, %s1744_s2, [#allocation4], %s1331_s28, %s1331_s28, %s1332_s29   ;;  %vm811_vm1 = vcmask 17408  }
 0x2e1   :  { %s1340_s22 = smov [#allocation10]  }
 0x2e2   :  { %s843_s23 = sshll.u32 %s1340_s22, 4  ;;  %s844_s23 = int_to_ptr.vmem [resolvable:$true] %s843_s23 }
 0x2e3   :  { %s1300_s24 = scalar_lea.vmem %s844_s23, 32  ;;  %p1305_p5 = scmp.lt.s32.totalorder %s844_s23, %s844_s23 }
 0x2e4   :  { %p1301_p4 = scmp.ne.s32.totalorder %s844_s23, %s1300_s24  ;;  %p1306_p6 = scmp.lt.s32.totalorder %s1300_s24, %s1300_s24 }
 0x2e6   :  { %p1307_p7 = por %p1306_p6, %p1305_p5 }
 0x2e8   :  { %p1308_p8 = pnand %p1307_p7, %p1301_p4 }
 0x39c   :  { %v806_v1 = vpop.f32.mrb[10].mxu1 }
 0x39d   :  { %v810_v17 = vmul.f32 0.78125, %v806_v1  ;;  %v1100_v21 = vpop.f32.mrb[11].mxu1 }
 0x39f   :  { %812 = vst.msk [vmem:[#allocation10] sm:$0x3] %vm811_vm1, %v810_v17 }
 0x3a0   :  { %1311 = shalt.err (!%p1308_p8)
}
 0x3a1   :  { %s1312_s27 = scalar_lea.hbm %s1747_s5, 32 }
 0x3a2   :  { %p1313_p9 = scmp.ne.s32.totalorder %s1747_s5, %s1312_s27  ;;  %p1316_p10 = scmp.lt.u32.totalorder %s1312_s27, %s1747_s5 }
 0x3a4   :  { %p1318_p11 = pnand %p1316_p10, %p1313_p9 }
 0x3a6   :  { %1321 = shalt.err (!%p1318_p11)
}
 0x3a7   :  { %846 = dma.vmem_to_hbm [thread:$0]  %s844_s23, 32, %s1747_s5, [#allocation9]  }
 0x3a8   :  { %1326 = dma.done.wait [#allocation4], 512  }
 0x3a9   :  { %1327 = vsyncadd [#allocation4], 4294966784 }
 0x3aa   :  { %1328 = dma.done.wait [#allocation9], 64  }
 0x3ab   :  { %1329 = vsyncadd [#allocation9], 4294967232 }
 0x3ac   :  { %858 = vsyncpa [#allocation3], 1 }
 0x3ad   :  { %859 = vsyncpa [#allocation6], 1 }
 0x3ae   :  { %860 = vsyncpa [#allocation4], 1 }
 0x3af   :  { %861 = vsyncpa [#allocation9], 1 }

</bundles_post_ra>
